<compile_context>
chip_gen: v6e
topology: v6e:2x2x1
jax: 0.10.0
libtpu: 0.0.40
codegen_flags: <defaults>
</compile_context>

<pallas_src>
import jax
import jax.numpy as jnp
from jax.experimental import pallas as pl
from jax.experimental.pallas import tpu as pltpu

PAD_ID = 1      # RoBERTa pad_token_id
BOS_ID = 0      # RoBERTa <s>
EOS_ID = 2      # RoBERTa </s>
SAFE_CODE = 0   # label code meaning 'safe' -> output label 0, anything else -> 1

_MAX_SLAB_WIDTH = 16384       # cap on the lane-dense last dim (elements)
_TARGET_TILE_ELEMS = 1 << 20  # ~4 MiB int32 input per grid step
_MIN_PALLAS_ELEMS = 1 << 20   # below this, plain jnp wins (launch overhead)


def _mask_kernel(ids_ref, mask_ref):
    # attention_mask: 1 for real tokens, 0 for padding.  Single VPU compare per
    # vreg; int8 store keeps HBM writeback at 1 byte/element.
    mask_ref[...] = (ids_ref[...] != PAD_ID).astype(jnp.int8)


def _choose_slab(B, L):
    """Pick a lane-dense (rows, W) view of the (B, L) ids for the elementwise
    compare.  Merging whole rows keeps the reshape a free, row-major metadata
    change (no copy)."""
    if L % 128 == 0:
        k = 1
        for cand in range(1, B + 1):
            if B % cand == 0 and L * cand <= _MAX_SLAB_WIDTH:
                k = cand
        return B // k, L * k
    # L not a multiple of 128: keep the full-extent last dim (legal; the ragged
    # lane tail only costs masked stores — perf, not correctness).
    return B, L


def _choose_tile_rows(rows, W):
    """32-row aligned tile (int8 min tile is (32,128)); ~_TARGET_TILE_ELEMS of
    input per step; capped so the grid has >=2 steps when rows allow it, so
    both v7x TensorCores get work.  Double-buffered footprint stays ~10 MiB,
    well under the 32 MiB scoped-VMEM default on v5e/v6e/v7x."""
    if rows <= 32:
        return rows  # full extent — always a legal block shape
    tb = max(32, (_TARGET_TILE_ELEMS // max(W, 1)) // 32 * 32)
    half = ((pl.cdiv(rows, 2) + 31) // 32) * 32     # guarantees >= 2 grid steps
    tb = min(tb, half)
    tb = min(tb, ((rows + 31) // 32) * 32)
    return max(32, tb)


def features_finetune_forward(ids, labels_raw, *, force_pallas=False):
    """ids: (B, L) integer token ids; labels_raw: (B,) int32 (0 == 'safe').

    Returns (ids, masks, labels_int) mirroring the PyTorch module's outputs.
    masks are int8 {0,1}; cast to a wider int downstream if required.
    """
    B, L = ids.shape
    ids = ids.astype(jnp.int32)

    # labels: trivial per-batch compare — keep it in XLA (fused, free) instead
    # of a lane-sparse Pallas output that would hit masked partial stores.
    labels_int = (labels_raw != SAFE_CODE).astype(jnp.int32)

    # Small-input fast path: fixed pallas_call dispatch cost exceeds the HBM
    # time of a tiny mask, and XLA fuses the compare with neighbouring ops.
    if (B * L < _MIN_PALLAS_ELEMS) and not force_pallas:
        masks = (ids != PAD_ID).astype(jnp.int8)
        return ids, masks, labels_int

    rows, W = _choose_slab(B, L)
    slab = ids.reshape(rows, W)          # free row-major metadata reshape
    tb = _choose_tile_rows(rows, W)

    # Exact out_shape + cdiv grid: no input padding, no output slicing — the
    # ragged final block's OOB reads are harmless and its OOB writes dropped.
    masks_slab = pl.pallas_call(
        _mask_kernel,
        out_shape=jax.ShapeDtypeStruct((rows, W), jnp.int8),
        grid=(pl.cdiv(rows, tb),),
        in_specs=[pl.BlockSpec((tb, W), lambda i: (i, 0))],
        out_specs=pl.BlockSpec((tb, W), lambda i: (i, 0)),
        compiler_params=pltpu.CompilerParams(
            # row tiles are independent -> shard across v7x's 2 TensorCores;
            # measured no-op on single-TC v5e/v6e, so it never hurts.
            dimension_semantics=("parallel",),
        ),
    )(slab)

    masks = masks_slab.reshape(B, L)

    # torch.stack(ids) equivalent: the stacked array IS the input — return it
    # directly, no pass-through copy through the kernel.
    return ids, masks, labels_int


def _make_fake_tokenized_batch(key, batch=2, seq_len=128, vocab=50265):
    """Simulates RobertaTokenizer.encode_plus output with padding='max_length':
    <s> tok ... tok </s> <pad> <pad> ...
    # TODO(synk): file reading, comment stripping and the tokenizer itself are
    # host-side string processing with no Pallas equivalent; simulated here.
    """
    k_tok, k_len, k_lab = jax.random.split(key, 3)
    toks = jax.random.randint(k_tok, (batch, seq_len), 3, vocab, dtype=jnp.int32)
    lengths = jax.random.randint(k_len, (batch,), max(2, seq_len // 4), seq_len,
                                 dtype=jnp.int32)
    pos = jnp.arange(seq_len, dtype=jnp.int32)[None, :]
    ids = jnp.where(pos < lengths[:, None], toks, PAD_ID)
    ids = ids.at[:, 0].set(BOS_ID)
    ids = jnp.where(pos == (lengths[:, None] - 1), EOS_ID, ids)
    labels_raw = jax.random.randint(k_lab, (batch,), 0, 2, dtype=jnp.int32)
    return ids, labels_raw


if __name__ == "__main__":
    k0, k1, k2 = jax.random.split(jax.random.PRNGKey(0), 3)

    # Case A: tiny batch (the module's typical call) -> jnp fast path.
    ids_a, lab_a = _make_fake_tokenized_batch(k0, batch=2, seq_len=128)
    out_a = features_finetune_forward(ids_a, lab_a)

    # Case B: Pallas path, L % 128 == 0 -> merged lane-dense slab (1, 8192).
    ids_b, lab_b = _make_fake_tokenized_batch(k1, batch=64, seq_len=128)
    out_b = features_finetune_forward(ids_b, lab_b, force_pallas=True)

    # Case C: Pallas path, L not a multiple of 128 -> full-extent lane dim,
    # 2-step grid with a ragged final row block (no padding, no slicing).
    ids_c, lab_c = _make_fake_tokenized_batch(k2, batch=72, seq_len=96)
    out_c = features_finetune_forward(ids_c, lab_c, force_pallas=True)

    jax.block_until_ready((out_a, out_b, out_c))

    for (ids_in, lab_in), (ids, masks, labels_int) in [
        ((ids_a, lab_a), out_a), ((ids_b, lab_b), out_b), ((ids_c, lab_c), out_c)
    ]:
        B, L = ids_in.shape
        ref_mask = (ids_in != PAD_ID).astype(jnp.int8)
        ref_lab = (lab_in != SAFE_CODE).astype(jnp.int32)
        assert ids.shape == (B, L) and masks.shape == (B, L)
        assert labels_int.shape == (B,)
        assert masks.dtype == jnp.int8
        assert bool(jnp.all(ids == ids_in.astype(jnp.int32)))
        assert bool(jnp.all(masks == ref_mask))
        assert bool(jnp.all(labels_int == ref_lab))

    print("KERNEL_OK")
</pallas_src>

<mosaic_0001>
module attributes {stable_mosaic.version = 11 : i64} {
  func.func @_mask_kernel(%arg0: i32, %arg1: memref<1x8192xi32, #tpu.memory_space<vmem>>, %arg2: memref<1x8192xi8, #tpu.memory_space<vmem>>) attributes {dimension_semantics = [#tpu.dimension_semantics<parallel>], iteration_bounds = array<i64: 1>, scalar_prefetch = 0 : i64, scratch_operands = 0 : i64, tpu.core_type = #tpu.core_type<tc>, window_params = [{transform_indices = @transform_0, window_bounds = array<i64: 1, 8192>}, {transform_indices = @transform_1, window_bounds = array<i64: 1, 8192>}]} {
    %c0 = arith.constant 0 : index
    %c0_0 = arith.constant 0 : index
    %0 = vector.load %arg1[%c0, %c0_0] : memref<1x8192xi32, #tpu.memory_space<vmem>>, vector<1x8192xi32>
    %c1_i32 = arith.constant 1 : i32
    %1 = vector.broadcast %c1_i32 : i32 to vector<1x8192xi32>
    %2 = arith.cmpi ne, %0, %1 : vector<1x8192xi32>
    %3 = arith.extui %2 : vector<1x8192xi1> to vector<1x8192xi8>
    %c0_1 = arith.constant 0 : index
    %c0_2 = arith.constant 0 : index
    %4 = vector.load %arg2[%c0_1, %c0_2] : memref<1x8192xi8, #tpu.memory_space<vmem>>, vector<1x8192xi8>
    tpu.vector_store %arg2[%c0_1, %c0_2], %3 {strides = array<i32>} : memref<1x8192xi8, #tpu.memory_space<vmem>>, vector<1x8192xi8>,
    return
  }
  func.func @transform_0(%arg0: i32) -> (i32, i32) {
    %c0_i32 = arith.constant 0 : i32
    %c0_i32_0 = arith.constant 0 : i32
    return %arg0, %c0_i32 : i32, i32
  }
  func.func @transform_1(%arg0: i32) -> (i32, i32) {
    %c0_i32 = arith.constant 0 : i32
    %c0_i32_0 = arith.constant 0 : i32
    return %arg0, %c0_i32 : i32, i32
  }
}

</mosaic_0001>

<bundles_post_ra>
// kernel: tpu_custom_call.1
= control target key start
LH: loop header
LB: loop body
LE: loop exit
PB: predicated region body
PF: predicated region fallthrough
CT: control target
= control target key end

     0   :  { %6 = vsyncpa [#allocation3], 0  ;;  %s1845_s0 = inlined_call_operand.hbm [shape: s32[1,8192], index: 0, kind: input, shape index: {}]   ;;  %s1846_s1 = inlined_call_operand.hbm [shape: s8[1,8192], index: 1, kind: output, shape index: {}]  }
   0x1   :  { %7 = vsyncpa [#allocation4], 0  ;;  %s1409_s6 = smov [#allocation2]  }
   0x2   :  { %s14_s7 = sshll.u32 %s1409_s6, 4  ;;  %s15_s7 = int_to_ptr.vmem [resolvable:$true] %s14_s7 }
   0x3   :  { %s1373_s8 = scalar_lea.vmem %s15_s7, 1024  ;;  %p1378_p1 = scmp.lt.s32.totalorder %s15_s7, %s15_s7 }
   0x4   :  { %p1374_p0 = scmp.ne.s32.totalorder %s15_s7, %s1373_s8  ;;  %p1379_p2 = scmp.lt.s32.totalorder %s1373_s8, %s1373_s8 }
   0x6   :  { %p1380_p3 = por %p1379_p2, %p1378_p1 }
   0x8   :  { %p1381_p4 = pnand %p1380_p3, %p1374_p0 }
   0xa   :  { %1384 = shalt.err (!%p1381_p4)
}
   0xb   :  { %17 = dma.hbm_to_vmem [thread:$0]  %s1845_s0, 1024, %s15_s7, [#allocation3]  }
   0xc   :  { %1405 = dma.done.wait [#allocation3], 1024  }
   0xd   :  { %1406 = vsyncadd [#allocation3], 4294966272  ;;  %v50_v0 = vlaneseq  ;;  %v1410_v1 = vmov 286326784   ;;  %v1411_v3 = vmov 858989090   ;;  %v23_v21 = vld [vmem:[#allocation2] sm:$0xff] }
   0xe   :  { %v48_v2 = vunpack.c.l.s4 %v1410_v1  ;;  %v55_v4 = vunpack.c.l.s4 %v1411_v3  ;;  %v1412_v6 = vmov 1431651396   ;;  %v1413_v8 = vmov 2004313702   ;;  %v24_v25 = vld [vmem:[#allocation2 + $0x8] sm:$0xff]  ;;  %v25_v30 = vld [vmem:[#allocation2 + $0x10] sm:$0xff] }
   0xf   :  { %v51_v5 = vshrl.u32 %v50_v0, 7  ;;  %v62_v7 = vunpack.c.l.s4 %v1412_v6  ;;  %v69_v9 = vunpack.c.l.s4 %v1413_v8  ;;  %v1414_v12 = vmov 1966171168   ;;  %v26_v62 = vld [vmem:[#allocation2 + $0x18] sm:$0xff]  ;;  %s1416_s0 = smov [#allocation5]  }
  0x10   :  { %v49_v10 = vunpack.c.0.s8 %v48_v2  ;;  %v56_v11 = vunpack.c.0.s8 %v55_v4  ;;  %v377_v13 = vunpack.c.l.s4 %v1414_v12  ;;  %vm1287_vm0 = vcmask 1040384   ;;  %s1348_s11 = sshll.u32 %s1416_s0, 4  ;;  %s1349_s11 = int_to_ptr.vmem [resolvable:$true] %s1348_s11 }
  0x11   :  { %v63_v14 = vunpack.c.0.s8 %v62_v7  ;;  %v70_v15 = vunpack.c.0.s8 %v69_v9  ;;  %vm31_vm1 = vcmp.ne.s32.totalorder %v23_v21, 1  ;;  %vm1288_vm2 = vsmask.f32 0  ;;  %s1385_s12 = scalar_lea.vmem %s1349_s11, 1024  ;;  %p1390_p6 = scmp.lt.s32.totalorder %s1349_s11, %s1349_s11 }
  0x12   :  { %v378_v16 = vunpack.c.0.s8 %v377_v13  ;;  %v1430_v17 = vsub.s32 %v49_v10, %v51_v5  ;;  %v1432_v18 = vsub.s32 %v56_v11, %v51_v5  ;;  %vm1290_vm3 = vcmask 1041409   ;;  %vm1446_vm7 = vmand %vm1287_vm0, %vm1288_vm2  ;;  %p1386_p5 = scmp.ne.s32.totalorder %s1349_s11, %s1385_s12  ;;  %p1391_p7 = scmp.lt.s32.totalorder %s1385_s12, %s1385_s12 }
  0x13   :  { %v1434_v19 = vsub.s32 %v63_v14, %v51_v5  ;;  %v1436_v20 = vsub.s32 %v70_v15, %v51_v5  ;;  %vm1291_vm4 = vsmask.f32 1024  ;;  %v1415_v22 = vmov 0  }
  0x14   :  { %v39_v23 = vsel %vm31_vm1, 1, %v1415_v22  ;;  %v1439_v24 = vsub.s32 %v378_v16, %v51_v5  ;;  %vm1294_vm5 = vcmask 1042434   ;;  %vm1295_vm6 = vsmask.f32 2048  ;;  %vm1452_vm1 = vmand %vm1290_vm3, %vm1291_vm4  ;;  %p1392_p8 = por %p1391_p7, %p1390_p6 }
  0x15   :  { %v53_v26 = vrot.slane %v39_v23, %v1430_v17  ;;  %v60_v27 = vrot.slane %v39_v23, %v1432_v18  ;;  %v67_v28 = vrot.slane %v39_v23, %v1434_v19  ;;  %v74_v29 = vrot.slane %v39_v23, %v1436_v20  ;;  %vm1293_vm3 = vmor %vm1452_vm1, %vm1446_vm7 }
  0x16   :  { %vm1298_vm8 = vcmask 1043459   ;;  %vm1299_vm9 = vsmask.f32 3072  ;;  %vm32_vm10 = vcmp.ne.s32.totalorder %v24_v25, 1  ;;  %vm33_vm11 = vcmp.ne.s32.totalorder %v25_v30, 1  ;;  %vm1472_vm4 = vmand %vm1294_vm5, %vm1295_vm6  ;;  %p1393_p9 = pnand %p1392_p8, %p1386_p5 }
  0x17   :  { %vm271_vm12 = vcmp.ne.s32.totalorder %v53_v26, 0  ;;  %vm272_vm13 = vcmp.ne.s32.totalorder %v60_v27, 0  ;;  %vm273_vm14 = vcmp.ne.s32.totalorder %v67_v28, 0  ;;  %vm274_vm15 = vcmp.ne.s32.totalorder %v74_v29, 0  ;;  %vm1490_vm5 = vmor %vm1472_vm4, %vm1293_vm3 }
  0x18   :  { %v303_v33 = vsel %vm271_vm12, 1, %v1415_v22  ;;  %v304_v34 = vsel %vm272_vm13, 1, %v1415_v22  ;;  %v305_v35 = vsel %vm273_vm14, 1, %v1415_v22  ;;  %v306_v36 = vsel %vm274_vm15, 1, %v1415_v22  ;;  %vm1499_vm6 = vmand %vm1298_vm8, %vm1299_vm9 }
  0x19   :  { %vm1303_vm2 = vsmask.f32 4096  ;;  %v335_v37 = vpack.c.b16 %v304_v34, %v303_v33  ;;  %v336_v38 = vpack.c.b16 %v306_v36, %v305_v35  ;;  %v40_v39 = vsel %vm32_vm10, 1, %v1415_v22  ;;  %vm1301_vm8 = vmor %vm1499_vm6, %vm1490_vm5 }
  0x1a   :  { %v41_v40 = vsel %vm33_vm11, 1, %v1415_v22  ;;  %v81_v41 = vrot.slane %v40_v39, %v1430_v17  ;;  %v88_v42 = vrot.slane %v40_v39, %v1432_v18  ;;  %v95_v43 = vrot.slane %v40_v39, %v1434_v19 }
  0x1b   :  { %v102_v44 = vrot.slane %v40_v39, %v1436_v20  ;;  %v337_v45 = vpack.c.b8 %v336_v38, %v335_v37  ;;  %v109_v47 = vrot.slane %v41_v40, %v1430_v17  ;;  %v116_v48 = vrot.slane %v41_v40, %v1432_v18 }
  0x1c   :  { %v123_v49 = vrot.slane %v41_v40, %v1434_v19  ;;  %vm1306_vm10 = vcmask 1045509   ;;  %vm1307_vm11 = vsmask.f32 5120  ;;  %vm275_vm12 = vcmp.ne.s32.totalorder %v81_v41, 0 }
  0x1d   :  { %vm276_vm13 = vcmp.ne.s32.totalorder %v88_v42, 0  ;;  %vm277_vm14 = vcmp.ne.s32.totalorder %v95_v43, 0  ;;  %vm278_vm15 = vcmp.ne.s32.totalorder %v102_v44, 0  ;;  %vm359_vm0 = vnez %v337_v45 }
  0x1e   :  { %v307_v50 = vsel %vm275_vm12, 1, %v1415_v22  ;;  %v308_v51 = vsel %vm276_vm13, 1, %v1415_v22  ;;  %v309_v52 = vsel %vm277_vm14, 1, %v1415_v22  ;;  %v367_v53 = vsel %vm359_vm0, 16843009, %v1415_v22  ;;  %vm1531_vm0 = vmand %vm1306_vm10, %vm1307_vm11 }
  0x1f   :  { %v310_v55 = vsel %vm278_vm15, 1, %v1415_v22  ;;  %v338_v56 = vpack.c.b16 %v308_v51, %v307_v50  ;;  %v130_v57 = vrot.slane %v41_v40, %v1436_v20  ;;  %v375_v58 = vcombine.high %v367_v53, %v367_v53 }
  0x20   :  { %v382_v59 = vrot.slane %v367_v53, %v1439_v24  ;;  %v339_v61 = vpack.c.b16 %v310_v55, %v309_v52  ;;  %vm279_vm7 = vcmp.ne.s32.totalorder %v109_v47, 0  ;;  %vm280_vm3 = vcmp.ne.s32.totalorder %v116_v48, 0 }
  0x21   :  { %vm281_vm4 = vcmp.ne.s32.totalorder %v123_v49, 0  ;;  %vm282_vm12 = vcmp.ne.s32.totalorder %v130_v57, 0  ;;  %v311_v63 = vsel %vm279_vm7, 1, %v1415_v22  ;;  %v389_v0 = vrot.slane %v375_v58, %v1439_v24  ;;  %v1321_v49 = vld [vmem:[#allocation5 + $0x8] sm:$0xff] }
  0x22   :  { %v390_v1 = vcombine.high %v382_v59, %v382_v59  ;;  %v398_v2 = vrot.slane %v382_v59, %v1439_v24  ;;  %v340_v3 = vpack.c.b8 %v339_v61, %v338_v56  ;;  %v312_v4 = vsel %vm280_vm3, 1, %v1415_v22 }
  0x23   :  { %v313_v5 = vsel %vm281_vm4, 1, %v1415_v22  ;;  %v314_v6 = vsel %vm282_vm12, 1, %v1415_v22  ;;  %v391_v7 = vcombine.high %v389_v0, %v389_v0  ;;  %v405_v8 = vrot.slane %v389_v0, %v1439_v24  ;;  %v1318_v0 = vld [vmem:[#allocation5] sm:$0xff] }
  0x24   :  { %v412_v9 = vrot.slane %v390_v1, %v1439_v24  ;;  %v420_v10 = vcombine.high %v398_v2, %v398_v2  ;;  %vm1857_vm13 = vcmask 1044484   ;;  %vm767_vm15 = vnez %v398_v2 }
  0x25   :  { %vm1304_vm14 = vmand %vm1857_vm13, %vm1303_vm2  ;;  %vm360_vm1 = vnez %v340_v3  ;;  %v341_v11 = vpack.c.b16 %v312_v4, %v311_v63  ;;  %v342_v12 = vpack.c.b16 %v314_v6, %v313_v5  ;;  %v419_v13 = vrot.slane %v391_v7, %v1439_v24 }
  0x26   :  { %v421_v14 = vcombine.high %v405_v8, %v405_v8  ;;  %v422_v15 = vcombine.high %v412_v9, %v412_v9  ;;  %vm768_vm3 = vnez %v412_v9  ;;  %vm769_vm4 = vnez %v420_v10  ;;  %vm1525_vm2 = vmor %vm1304_vm14, %vm1301_vm8 }
  0x27   :  { %vm771_vm12 = vnez %v405_v8  ;;  %v831_v16 = vsel %vm767_vm15, 16843009, %v1415_v22  ;;  %v832_v21 = vsel %vm768_vm3, 16843009, %v1415_v22  ;;  %v423_v25 = vcombine.high %v419_v13, %v419_v13  ;;  %vm1309_vm10 = vmor %vm1531_vm0, %vm1525_vm2 }
  0x28   :  { %vm770_vm13 = vnez %v422_v15  ;;  %vm772_vm7 = vnez %v419_v13  ;;  %vm773_vm9 = vnez %v421_v14  ;;  %v833_v27 = vsel %vm769_vm4, 16843009, %v1415_v22 }
  0x29   :  { %v834_v28 = vsel %vm770_vm13, 16843009, %v1415_v22  ;;  %v835_v29 = vsel %vm771_vm12, 16843009, %v1415_v22  ;;  %v895_v30 = vcombine.low %v831_v16, %v832_v21  ;;  %vm774_vm5 = vnez %v423_v25 }
  0x2a   :  { %v836_v31 = vsel %vm772_vm7, 16843009, %v1415_v22  ;;  %v837_v32 = vsel %vm773_vm9, 16843009, %v1415_v22  ;;  %v896_v33 = vcombine.low %v833_v27, %v834_v28  ;;  %v838_v34 = vsel %vm774_vm5, 16843009, %v1415_v22 }
  0x2b   :  { %v897_v35 = vcombine.low %v835_v29, %v836_v31  ;;  %v905_v36 = vrot.slane %v895_v30, %v1439_v24  ;;  %v368_v37 = vsel %vm360_vm1, 16843009, %v1415_v22  ;;  %v898_v38 = vcombine.low %v837_v32, %v838_v34  ;;  %v27_v29 = vld [vmem:[#allocation2 + $0x20] sm:$0xff] }
  0x2c   :  { %v912_v39 = vrot.slane %v896_v33, %v1439_v24  ;;  %vm1862_vm11 = vsmask.f32 6144  ;;  %vm1863_vm6 = vcmask 1046534   ;;  %v424_v40 = vcombine.high %v368_v37, %v368_v37 }
  0x2d   :  { %vm1312_vm8 = vmand %vm1863_vm6, %vm1862_vm11  ;;  %v431_v41 = vrot.slane %v368_v37, %v1439_v24  ;;  %v919_v42 = vrot.slane %v897_v35, %v1439_v24  ;;  %vm1315_vm9 = vsmask.f32 7168  ;;  %v343_v43 = vpack.c.b8 %v342_v12, %v341_v11 }
  0x2e   :  { %vm1864_vm14 = vcmp.ne.s32.totalorder %v26_v62, 1  ;;  %v926_v45 = vrot.slane %v898_v38, %v1439_v24  ;;  %v927_v46 = vcombine.low %v905_v36, %v912_v39  ;;  %v438_v47 = vrot.slane %v424_v40, %v1439_v24  ;;  %vm1564_vm1 = vmor %vm1312_vm8, %vm1309_vm10 }
  0x2f   :  { %v1555_v44 = vsel %vm1864_vm14, 1, %v1415_v22  ;;  %v439_v48 = vcombine.high %v431_v41, %v431_v41  ;;  %v447_v50 = vrot.slane %v431_v41, %v1439_v24  ;;  %vm361_vm15 = vnez %v343_v43 }
  0x30   :  { %v137_v51 = vrot.slane %v1555_v44, %v1430_v17  ;;  %v144_v52 = vrot.slane %v1555_v44, %v1432_v18  ;;  %v928_v53 = vcombine.low %v919_v42, %v926_v45  ;;  %v935_v54 = vrot.slane %v927_v46, %v1439_v24 }
  0x31   :  { %vm1867_vm7 = vcmask 1047559   ;;  %v440_v55 = vcombine.high %v438_v47, %v438_v47  ;;  %v454_v56 = vrot.slane %v438_v47, %v1439_v24  ;;  %v461_v57 = vrot.slane %v439_v48, %v1439_v24 }
  0x32   :  { %vm1316_vm3 = vmand %vm1867_vm7, %vm1315_vm9  ;;  %v469_v58 = vcombine.high %v447_v50, %v447_v50  ;;  %vm775_vm0 = vnez %v447_v50  ;;  %v369_v59 = vsel %vm361_vm15, 16843009, %v1415_v22  ;;  %v942_v60 = vrot.slane %v928_v53, %v1439_v24 }
  0x33   :  { %v468_v61 = vrot.slane %v440_v55, %v1439_v24  ;;  %v470_v62 = vcombine.high %v454_v56, %v454_v56  ;;  %vm779_vm4 = vnez %v454_v56  ;;  %vm1582_vm12 = vmor %vm1316_vm3, %vm1564_vm1  ;;  %v471_v1 = vcombine.high %v461_v57, %v461_v57 }
  0x34   :  { %vm776_vm2 = vnez %v461_v57  ;;  %vm777_vm13 = vnez %v469_v58  ;;  %v839_v2 = vsel %vm775_vm0, 16843009, %v1415_v22  ;;  %v943_v3 = vcombine.low %v935_v54, %v942_v60 }
  0x35   :  { %v472_v4 = vcombine.high %v468_v61, %v468_v61  ;;  %vm780_vm5 = vnez %v468_v61  ;;  %vm781_vm10 = vnez %v470_v62  ;;  %vm778_vm11 = vnez %v471_v1 }
  0x36   :  { %v840_v5 = vsel %vm776_vm2, 16843009, %v1415_v22  ;;  %v841_v6 = vsel %vm777_vm13, 16843009, %v1415_v22  ;;  %v843_v7 = vsel %vm779_vm4, 16843009, %v1415_v22  ;;  %v1319_v8 = vsel %vm1582_vm12, %v943_v3, %v1318_v0 }
  0x37   :  { %vm782_vm6 = vnez %v472_v4  ;;  %v842_v9 = vsel %vm778_vm11, 16843009, %v1415_v22  ;;  %v844_v10 = vsel %vm780_vm5, 16843009, %v1415_v22  ;;  %1320 = vst [vmem:[#allocation5] sm:$0xff] %v1319_v8  ;;  %v944_v13 = vcombine.low %v839_v2, %v840_v5  ;;  %v28_v3 = vld [vmem:[#allocation2 + $0x28] sm:$0xff] }
  0x38   :  { %v845_v11 = vsel %vm781_vm10, 16843009, %v1415_v22  ;;  %v846_v12 = vsel %vm782_vm6, 16843009, %v1415_v22  ;;  %v945_v14 = vcombine.low %v841_v6, %v842_v9  ;;  %v946_v15 = vcombine.low %v843_v7, %v844_v10 }
  0x39   :  { %v947_v16 = vcombine.low %v845_v11, %v846_v12  ;;  %v473_v21 = vcombine.high %v369_v59, %v369_v59  ;;  %v480_v23 = vrot.slane %v369_v59, %v1439_v24  ;;  %v954_v25 = vrot.slane %v944_v13, %v1439_v24 }
  0x3a   :  { %v961_v26 = vrot.slane %v945_v14, %v1439_v24  ;;  %v151_v27 = vrot.slane %v1555_v44, %v1434_v19  ;;  %v158_v28 = vrot.slane %v1555_v44, %v1436_v20  ;;  %v968_v30 = vrot.slane %v946_v15, %v1439_v24 }
  0x3b   :  { %v975_v31 = vrot.slane %v947_v16, %v1439_v24  ;;  %v487_v32 = vrot.slane %v473_v21, %v1439_v24  ;;  %v488_v33 = vcombine.high %v480_v23, %v480_v23  ;;  %v496_v35 = vrot.slane %v480_v23, %v1439_v24 }
  0x3c   :  { %v976_v34 = vcombine.low %v954_v25, %v961_v26  ;;  %vm1607_vm8 = vcmp.ne.s32.totalorder %v137_v51, 0  ;;  %vm1611_vm9 = vcmp.ne.s32.totalorder %v144_v52, 0  ;;  %vm35_vm14 = vcmp.ne.s32.totalorder %v27_v29, 1  ;;  %v1324_v29 = vld [vmem:[#allocation5 + $0x10] sm:$0xff] }
  0x3d   :  { %v977_v38 = vcombine.low %v968_v30, %v975_v31  ;;  %v489_v39 = vcombine.high %v487_v32, %v487_v32  ;;  %v503_v40 = vrot.slane %v487_v32, %v1439_v24  ;;  %v510_v41 = vrot.slane %v488_v33, %v1439_v24 }
  0x3e   :  { %v984_v42 = vrot.slane %v976_v34, %v1439_v24  ;;  %v518_v43 = vcombine.high %v496_v35, %v496_v35  ;;  %vm783_vm1 = vnez %v496_v35  ;;  %vm1618_vm15 = vcmp.ne.s32.totalorder %v151_v27, 0 }
  0x3f   :  { %v991_v45 = vrot.slane %v977_v38, %v1439_v24  ;;  %v517_v46 = vrot.slane %v489_v39, %v1439_v24  ;;  %v519_v47 = vcombine.high %v503_v40, %v503_v40  ;;  %v520_v48 = vcombine.high %v510_v41, %v510_v41 }
  0x40   :  { %vm784_vm7 = vnez %v510_v41  ;;  %vm785_vm3 = vnez %v518_v43  ;;  %vm787_vm0 = vnez %v503_v40  ;;  %v847_v50 = vsel %vm783_vm1, 16843009, %v1415_v22 }
  0x41   :  { %v992_v51 = vcombine.low %v984_v42, %v991_v45  ;;  %v521_v52 = vcombine.high %v517_v46, %v517_v46  ;;  %vm786_vm4 = vnez %v520_v48  ;;  %vm788_vm2 = vnez %v517_v46 }
  0x42   :  { %vm789_vm13 = vnez %v519_v47  ;;  %v848_v53 = vsel %vm784_vm7, 16843009, %v1415_v22  ;;  %v849_v54 = vsel %vm785_vm3, 16843009, %v1415_v22  ;;  %v850_v55 = vsel %vm786_vm4, 16843009, %v1415_v22 }
  0x43   :  { %v1322_v56 = vsel %vm1582_vm12, %v992_v51, %v1321_v49  ;;  %vm790_vm5 = vnez %v521_v52  ;;  %v851_v57 = vsel %vm787_vm0, 16843009, %v1415_v22  ;;  %v852_v58 = vsel %vm788_vm2, 16843009, %v1415_v22 }
  0x44   :  { %1323 = vst [vmem:[#allocation5 + $0x8] sm:$0xff] %v1322_v56  ;;  %v853_v59 = vsel %vm789_vm13, 16843009, %v1415_v22  ;;  %v854_v60 = vsel %vm790_vm5, 16843009, %v1415_v22  ;;  %v993_v61 = vcombine.low %v847_v50, %v848_v53  ;;  %v994_v62 = vcombine.low %v849_v54, %v850_v55 }
  0x45   :  { %v995_v0 = vcombine.low %v851_v57, %v852_v58  ;;  %v996_v1 = vcombine.low %v853_v59, %v854_v60  ;;  %vm286_vm10 = vcmp.ne.s32.totalorder %v158_v28, 0  ;;  %v315_v2 = vsel %vm1607_vm8, 1, %v1415_v22 }
  0x46   :  { %v1003_v4 = vrot.slane %v993_v61, %v1439_v24  ;;  %v1010_v5 = vrot.slane %v994_v62, %v1439_v24  ;;  %v316_v6 = vsel %vm1611_vm9, 1, %v1415_v22  ;;  %v317_v7 = vsel %vm1618_vm15, 1, %v1415_v22 }
  0x47   :  { %v1017_v8 = vrot.slane %v995_v0, %v1439_v24  ;;  %v1024_v9 = vrot.slane %v996_v1, %v1439_v24  ;;  %v318_v10 = vsel %vm286_vm10, 1, %v1415_v22  ;;  %v344_v11 = vpack.c.b16 %v316_v6, %v315_v2 }
  0x48   :  { %v1025_v12 = vcombine.low %v1003_v4, %v1010_v5  ;;  %v345_v13 = vpack.c.b16 %v318_v10, %v317_v7  ;;  %v43_v14 = vsel %vm35_vm14, 1, %v1415_v22  ;;  %vm36_vm11 = vcmp.ne.s32.totalorder %v28_v3, 1 }
  0x49   :  { %v1026_v15 = vcombine.low %v1017_v8, %v1024_v9  ;;  %v165_v16 = vrot.slane %v43_v14, %v1430_v17  ;;  %v172_v21 = vrot.slane %v43_v14, %v1432_v18  ;;  %v179_v23 = vrot.slane %v43_v14, %v1434_v19 }
  0x4a   :  { %v1033_v25 = vrot.slane %v1025_v12, %v1439_v24  ;;  %v346_v26 = vpack.c.b8 %v345_v13, %v344_v11  ;;  %v186_v27 = vrot.slane %v43_v14, %v1436_v20  ;;  %v44_v28 = vsel %vm36_vm11, 1, %v1415_v22 }
  0x4b   :  { %v1040_v30 = vrot.slane %v1026_v15, %v1439_v24  ;;  %vm287_vm6 = vcmp.ne.s32.totalorder %v165_v16, 0  ;;  %vm288_vm8 = vcmp.ne.s32.totalorder %v172_v21, 0  ;;  %vm289_vm9 = vcmp.ne.s32.totalorder %v179_v23, 0  ;;  %v29_v16 = vld [vmem:[#allocation2 + $0x30] sm:$0xff] }
  0x4c   :  { %vm362_vm14 = vnez %v346_v26  ;;  %vm290_vm1 = vcmp.ne.s32.totalorder %v186_v27, 0  ;;  %v319_v31 = vsel %vm287_vm6, 1, %v1415_v22  ;;  %v320_v32 = vsel %vm288_vm8, 1, %v1415_v22 }
  0x4d   :  { %v1041_v33 = vcombine.low %v1033_v25, %v1040_v30  ;;  %v370_v34 = vsel %vm362_vm14, 16843009, %v1415_v22  ;;  %v321_v35 = vsel %vm289_vm9, 1, %v1415_v22  ;;  %v322_v36 = vsel %vm290_vm1, 1, %v1415_v22 }
  0x4e   :  { %v522_v37 = vcombine.high %v370_v34, %v370_v34  ;;  %v529_v38 = vrot.slane %v370_v34, %v1439_v24  ;;  %v347_v39 = vpack.c.b16 %v320_v32, %v319_v31  ;;  %v348_v40 = vpack.c.b16 %v322_v36, %v321_v35 }
  0x4f   :  { %v1325_v41 = vsel %vm1582_vm12, %v1041_v33, %v1324_v29  ;;  %v193_v42 = vrot.slane %v44_v28, %v1430_v17  ;;  %v200_v43 = vrot.slane %v44_v28, %v1432_v18  ;;  %v207_v44 = vrot.slane %v44_v28, %v1434_v19 }
  0x50   :  { %1326 = vst [vmem:[#allocation5 + $0x10] sm:$0xff] %v1325_v41  ;;  %v536_v45 = vrot.slane %v522_v37, %v1439_v24  ;;  %v537_v46 = vcombine.high %v529_v38, %v529_v38  ;;  %v545_v47 = vrot.slane %v529_v38, %v1439_v24  ;;  %v349_v48 = vpack.c.b8 %v348_v40, %v347_v39 }
  0x51   :  { %v214_v49 = vrot.slane %v44_v28, %v1436_v20  ;;  %vm291_vm15 = vcmp.ne.s32.totalorder %v193_v42, 0  ;;  %vm1671_vm7 = vcmp.ne.s32.totalorder %v200_v43, 0  ;;  %vm1675_vm3 = vcmp.ne.s32.totalorder %v207_v44, 0  ;;  %v1327_v44 = vld [vmem:[#allocation5 + $0x18] sm:$0xff] }
  0x52   :  { %v538_v52 = vcombine.high %v536_v45, %v536_v45  ;;  %v552_v53 = vrot.slane %v536_v45, %v1439_v24  ;;  %v559_v54 = vrot.slane %v537_v46, %v1439_v24  ;;  %v567_v55 = vcombine.high %v545_v47, %v545_v47 }
  0x53   :  { %vm791_vm0 = vnez %v545_v47  ;;  %vm363_vm4 = vnez %v349_v48  ;;  %vm1681_vm2 = vcmp.ne.s32.totalorder %v214_v49, 0  ;;  %v323_v57 = vsel %vm291_vm15, 1, %v1415_v22 }
  0x54   :  { %v566_v58 = vrot.slane %v538_v52, %v1439_v24  ;;  %v568_v59 = vcombine.high %v552_v53, %v552_v53  ;;  %v569_v60 = vcombine.high %v559_v54, %v559_v54  ;;  %vm792_vm13 = vnez %v559_v54 }
  0x55   :  { %vm793_vm5 = vnez %v567_v55  ;;  %vm795_vm10 = vnez %v552_v53  ;;  %v855_v61 = vsel %vm791_vm0, 16843009, %v1415_v22  ;;  %v856_v62 = vsel %vm792_vm13, 16843009, %v1415_v22 }
  0x56   :  { %v570_v0 = vcombine.high %v566_v58, %v566_v58  ;;  %vm794_vm11 = vnez %v569_v60  ;;  %vm796_vm6 = vnez %v566_v58  ;;  %vm797_vm8 = vnez %v568_v59 }
  0x57   :  { %v857_v1 = vsel %vm793_vm5, 16843009, %v1415_v22  ;;  %v858_v2 = vsel %vm794_vm11, 16843009, %v1415_v22  ;;  %v859_v3 = vsel %vm795_vm10, 16843009, %v1415_v22  ;;  %v1042_v4 = vcombine.low %v855_v61, %v856_v62 }
  0x58   :  { %vm798_vm9 = vnez %v570_v0  ;;  %v860_v5 = vsel %vm796_vm6, 16843009, %v1415_v22  ;;  %v861_v6 = vsel %vm797_vm8, 16843009, %v1415_v22  ;;  %v1043_v7 = vcombine.low %v857_v1, %v858_v2 }
  0x59   :  { %v862_v8 = vsel %vm798_vm9, 16843009, %v1415_v22  ;;  %v1044_v9 = vcombine.low %v859_v3, %v860_v5  ;;  %v1052_v10 = vrot.slane %v1042_v4, %v1439_v24  ;;  %v371_v11 = vsel %vm363_vm4, 16843009, %v1415_v22 }
  0x5a   :  { %v1045_v12 = vcombine.low %v861_v6, %v862_v8  ;;  %v1059_v13 = vrot.slane %v1043_v7, %v1439_v24  ;;  %v571_v14 = vcombine.high %v371_v11, %v371_v11  ;;  %v578_v15 = vrot.slane %v371_v11, %v1439_v24 }
  0x5b   :  { %v1066_v21 = vrot.slane %v1044_v9, %v1439_v24  ;;  %v324_v23 = vsel %vm1671_vm7, 1, %v1415_v22  ;;  %v325_v25 = vsel %vm1675_vm3, 1, %v1415_v22  ;;  %v326_v26 = vsel %vm1681_vm2, 1, %v1415_v22 }
  0x5c   :  { %v1073_v27 = vrot.slane %v1045_v12, %v1439_v24  ;;  %v1074_v28 = vcombine.low %v1052_v10, %v1059_v13  ;;  %v585_v30 = vrot.slane %v571_v14, %v1439_v24  ;;  %v586_v29 = vcombine.high %v578_v15, %v578_v15 }
  0x5d   :  { %v594_v31 = vrot.slane %v578_v15, %v1439_v24  ;;  %v350_v32 = vpack.c.b16 %v324_v23, %v323_v57  ;;  %v351_v33 = vpack.c.b16 %v326_v26, %v325_v25  ;;  %vm37_vm14 = vcmp.ne.s32.totalorder %v29_v16, 1 }
  0x5e   :  { %v1075_v34 = vcombine.low %v1066_v21, %v1073_v27  ;;  %v1082_v35 = vrot.slane %v1074_v28, %v1439_v24  ;;  %v587_v36 = vcombine.high %v585_v30, %v585_v30  ;;  %v601_v37 = vrot.slane %v585_v30, %v1439_v24  ;;  %v1330_v28 = vld [vmem:[#allocation5 + $0x20] sm:$0xff] }
  0x5f   :  { %v608_v38 = vrot.slane %v586_v29, %v1439_v24  ;;  %v616_v39 = vcombine.high %v594_v31, %v594_v31  ;;  %vm799_vm1 = vnez %v594_v31  ;;  %v352_v40 = vpack.c.b8 %v351_v33, %v350_v32 }
  0x60   :  { %v1089_v41 = vrot.slane %v1075_v34, %v1439_v24  ;;  %v615_v42 = vrot.slane %v587_v36, %v1439_v24  ;;  %v617_v43 = vcombine.high %v601_v37, %v601_v37  ;;  %vm803_vm15 = vnez %v601_v37 }
  0x61   :  { %v618_v45 = vcombine.high %v608_v38, %v608_v38  ;;  %vm800_vm7 = vnez %v608_v38  ;;  %vm801_vm3 = vnez %v616_v39  ;;  %v863_v46 = vsel %vm799_vm1, 16843009, %v1415_v22 }
  0x62   :  { %v1090_v47 = vcombine.low %v1082_v35, %v1089_v41  ;;  %v619_v48 = vcombine.high %v615_v42, %v615_v42  ;;  %vm804_vm0 = vnez %v615_v42  ;;  %vm805_vm4 = vnez %v617_v43 }
  0x63   :  { %vm802_vm2 = vnez %v618_v45  ;;  %v864_v49 = vsel %vm800_vm7, 16843009, %v1415_v22  ;;  %v865_v50 = vsel %vm801_vm3, 16843009, %v1415_v22  ;;  %v867_v51 = vsel %vm803_vm15, 16843009, %v1415_v22 }
  0x64   :  { %v1328_v52 = vsel %vm1582_vm12, %v1090_v47, %v1327_v44  ;;  %vm806_vm13 = vnez %v619_v48  ;;  %v866_v53 = vsel %vm802_vm2, 16843009, %v1415_v22  ;;  %v868_v54 = vsel %vm804_vm0, 16843009, %v1415_v22 }
  0x65   :  { %1329 = vst [vmem:[#allocation5 + $0x18] sm:$0xff] %v1328_v52  ;;  %v869_v55 = vsel %vm805_vm4, 16843009, %v1415_v22  ;;  %v870_v56 = vsel %vm806_vm13, 16843009, %v1415_v22  ;;  %v1091_v57 = vcombine.low %v863_v46, %v864_v49  ;;  %v1092_v58 = vcombine.low %v865_v50, %v866_v53  ;;  %v30_v49 = vld [vmem:[#allocation2 + $0x38] sm:$0xff] }
  0x66   :  { %v1093_v59 = vcombine.low %v867_v51, %v868_v54  ;;  %v1094_v60 = vcombine.low %v869_v55, %v870_v56  ;;  %vm364_vm5 = vnez %v352_v40  ;;  %v45_v61 = vsel %vm37_vm14, 1, %v1415_v22 }
  0x67   :  { %v1101_v62 = vrot.slane %v1091_v57, %v1439_v24  ;;  %v1108_v0 = vrot.slane %v1092_v58, %v1439_v24  ;;  %v372_v1 = vsel %vm364_vm5, 16843009, %v1415_v22  ;;  %v221_v2 = vrot.slane %v45_v61, %v1430_v17 }
  0x68   :  { %v1115_v3 = vrot.slane %v1093_v59, %v1439_v24  ;;  %v1122_v4 = vrot.slane %v1094_v60, %v1439_v24  ;;  %v620_v5 = vcombine.high %v372_v1, %v372_v1  ;;  %v627_v6 = vrot.slane %v372_v1, %v1439_v24 }
  0x69   :  { %v1123_v7 = vcombine.low %v1101_v62, %v1108_v0  ;;  %v228_v8 = vrot.slane %v45_v61, %v1432_v18  ;;  %v235_v9 = vrot.slane %v45_v61, %v1434_v19  ;;  %v242_v10 = vrot.slane %v45_v61, %v1436_v20 }
  0x6a   :  { %v1124_v11 = vcombine.low %v1115_v3, %v1122_v4  ;;  %v634_v12 = vrot.slane %v620_v5, %v1439_v24  ;;  %v635_v13 = vcombine.high %v627_v6, %v627_v6  ;;  %v643_v14 = vrot.slane %v627_v6, %v1439_v24 }
  0x6b   :  { %v1131_v15 = vrot.slane %v1123_v7, %v1439_v24  ;;  %vm295_vm10 = vcmp.ne.s32.totalorder %v221_v2, 0  ;;  %vm1743_vm11 = vcmp.ne.s32.totalorder %v228_v8, 0  ;;  %vm1747_vm6 = vcmp.ne.s32.totalorder %v235_v9, 0  ;;  %v1333_v7 = vld [vmem:[#allocation5 + $0x28] sm:$0xff] }
  0x6c   :  { %v1138_v23 = vrot.slane %v1124_v11, %v1439_v24  ;;  %v636_v25 = vcombine.high %v634_v12, %v634_v12  ;;  %v650_v26 = vrot.slane %v634_v12, %v1439_v24  ;;  %v657_v27 = vrot.slane %v635_v13, %v1439_v24 }
  0x6d   :  { %v665_v30 = vcombine.high %v643_v14, %v643_v14  ;;  %vm807_vm8 = vnez %v643_v14  ;;  %vm1754_vm9 = vcmp.ne.s32.totalorder %v242_v10, 0  ;;  %v327_v31 = vsel %vm295_vm10, 1, %v1415_v22 }
  0x6e   :  { %v1139_v32 = vcombine.low %v1131_v15, %v1138_v23  ;;  %v664_v33 = vrot.slane %v636_v25, %v1439_v24  ;;  %v666_v34 = vcombine.high %v650_v26, %v650_v26  ;;  %v667_v35 = vcombine.high %v657_v27, %v657_v27 }
  0x6f   :  { %vm808_vm14 = vnez %v657_v27  ;;  %vm809_vm1 = vnez %v665_v30  ;;  %vm811_vm15 = vnez %v650_v26  ;;  %v871_v36 = vsel %vm807_vm8, 16843009, %v1415_v22 }
  0x70   :  { %v1331_v37 = vsel %vm1582_vm12, %v1139_v32, %v1330_v28  ;;  %v668_v38 = vcombine.high %v664_v33, %v664_v33  ;;  %vm810_vm7 = vnez %v667_v35  ;;  %vm812_vm3 = vnez %v664_v33 }
  0x71   :  { %1332 = vst [vmem:[#allocation5 + $0x20] sm:$0xff] %v1331_v37  ;;  %vm813_vm0 = vnez %v666_v34  ;;  %v872_v39 = vsel %vm808_vm14, 16843009, %v1415_v22  ;;  %v873_v40 = vsel %vm809_vm1, 16843009, %v1415_v22  ;;  %v328_v51 = vsel %vm1743_vm11, 1, %v1415_v22 }
  0x72   :  { %v874_v41 = vsel %vm810_vm7, 16843009, %v1415_v22  ;;  %vm814_vm4 = vnez %v668_v38  ;;  %v875_v42 = vsel %vm811_vm15, 16843009, %v1415_v22  ;;  %v876_v43 = vsel %vm812_vm3, 16843009, %v1415_v22 }
  0x73   :  { %v877_v44 = vsel %vm813_vm0, 16843009, %v1415_v22  ;;  %v878_v45 = vsel %vm814_vm4, 16843009, %v1415_v22  ;;  %v1140_v46 = vcombine.low %v871_v36, %v872_v39  ;;  %v1141_v47 = vcombine.low %v873_v40, %v874_v41 }
  0x74   :  { %v1142_v48 = vcombine.low %v875_v42, %v876_v43  ;;  %v1143_v50 = vcombine.low %v877_v44, %v878_v45  ;;  %v329_v52 = vsel %vm1747_vm6, 1, %v1415_v22  ;;  %v330_v53 = vsel %vm1754_vm9, 1, %v1415_v22 }
  0x75   :  { %v1150_v54 = vrot.slane %v1140_v46, %v1439_v24  ;;  %v1157_v55 = vrot.slane %v1141_v47, %v1439_v24  ;;  %v353_v57 = vpack.c.b16 %v328_v51, %v327_v31  ;;  %v354_v59 = vpack.c.b16 %v330_v53, %v329_v52 }
  0x76   :  { %v1164_v56 = vrot.slane %v1142_v48, %v1439_v24  ;;  %v1171_v58 = vrot.slane %v1143_v50, %v1439_v24  ;;  %vm38_vm2 = vcmp.ne.s32.totalorder %v30_v49, 1 }
  0x77   :  { %v1172_v60 = vcombine.low %v1150_v54, %v1157_v55  ;;  %v46_v61 = vsel %vm38_vm2, 1, %v1415_v22  ;;  %v355_v0 = vpack.c.b8 %v354_v59, %v353_v57 }
  0x78   :  { %v1173_v62 = vcombine.low %v1164_v56, %v1171_v58  ;;  %v249_v1 = vrot.slane %v46_v61, %v1430_v17  ;;  %v256_v2 = vrot.slane %v46_v61, %v1432_v18  ;;  %v263_v4 = vrot.slane %v46_v61, %v1434_v19 }
  0x79   :  { %v1180_v3 = vrot.slane %v1172_v60, %v1439_v24  ;;  %v270_v5 = vrot.slane %v46_v61, %v1436_v20  ;;  %vm365_vm13 = vnez %v355_v0  ;;  %v1336_v0 = vld [vmem:[#allocation5 + $0x30] sm:$0xff] }
  0x7a   :  { %v1187_v6 = vrot.slane %v1173_v62, %v1439_v24  ;;  %vm299_vm5 = vcmp.ne.s32.totalorder %v249_v1, 0  ;;  %vm300_vm10 = vcmp.ne.s32.totalorder %v256_v2, 0  ;;  %v373_v8 = vsel %vm365_vm13, 16843009, %v1415_v22 }
  0x7b   :  { %vm301_vm11 = vcmp.ne.s32.totalorder %v263_v4, 0  ;;  %vm302_vm6 = vcmp.ne.s32.totalorder %v270_v5, 0  ;;  %v331_v17 = vsel %vm299_vm5, 1, %v1415_v22  ;;  %v669_v18 = vcombine.high %v373_v8, %v373_v8 }
  0x7c   :  { %v1188_v9 = vcombine.low %v1180_v3, %v1187_v6  ;;  %v676_v10 = vrot.slane %v373_v8, %v1439_v24  ;;  %v332_v19 = vsel %vm300_vm10, 1, %v1415_v22  ;;  %v333_v20 = vsel %vm301_vm11, 1, %v1415_v22 }
  0x7d   :  { %v334_v11 = vsel %vm302_vm6, 1, %v1415_v22  ;;  %v356_v12 = vpack.c.b16 %v332_v19, %v331_v17  ;;  %v683_v14 = vrot.slane %v669_v18, %v1439_v24 }
  0x7e   :  { %v1334_v13 = vsel %vm1582_vm12, %v1188_v9, %v1333_v7  ;;  %v684_v15 = vcombine.high %v676_v10, %v676_v10  ;;  %v692_v16 = vrot.slane %v676_v10, %v1439_v24  ;;  %v357_v21 = vpack.c.b16 %v334_v11, %v333_v20 }
  0x7f   :  { %1335 = vst [vmem:[#allocation5 + $0x28] sm:$0xff] %v1334_v13  ;;  %v685_v23 = vcombine.high %v683_v14, %v683_v14  ;;  %v699_v25 = vrot.slane %v683_v14, %v1439_v24 }
  0x80   :  { %v706_v26 = vrot.slane %v684_v15, %v1439_v24  ;;  %v714_v27 = vcombine.high %v692_v16, %v692_v16  ;;  %vm815_vm8 = vnez %v692_v16  ;;  %v358_v28 = vpack.c.b8 %v357_v21, %v356_v12 }
  0x81   :  { %v713_v30 = vrot.slane %v685_v23, %v1439_v24  ;;  %v715_v29 = vcombine.high %v699_v25, %v699_v25  ;;  %vm819_vm1 = vnez %v699_v25  ;;  %v879_v32 = vsel %vm815_vm8, 16843009, %v1415_v22 }
  0x82   :  { %v716_v31 = vcombine.high %v706_v26, %v706_v26  ;;  %vm816_vm9 = vnez %v706_v26  ;;  %vm817_vm14 = vnez %v714_v27  ;;  %v883_v37 = vsel %vm819_vm1, 16843009, %v1415_v22 }
  0x83   :  { %v880_v33 = vsel %vm816_vm9, 16843009, %v1415_v22  ;;  %v717_v34 = vcombine.high %v713_v30, %v713_v30  ;;  %vm820_vm7 = vnez %v713_v30  ;;  %vm821_vm3 = vnez %v715_v29 }
  0x84   :  { %vm818_vm15 = vnez %v716_v31  ;;  %v881_v35 = vsel %vm817_vm14, 16843009, %v1415_v22  ;;  %v1189_v38 = vcombine.low %v879_v32, %v880_v33  ;;  %v884_v39 = vsel %vm820_vm7, 16843009, %v1415_v22 }
  0x85   :  { %v882_v36 = vsel %vm818_vm15, 16843009, %v1415_v22  ;;  %vm822_vm0 = vnez %v717_v34  ;;  %v885_v40 = vsel %vm821_vm3, 16843009, %v1415_v22  ;;  %v1191_v43 = vcombine.low %v883_v37, %v884_v39 }
  0x86   :  { %v1190_v41 = vcombine.low %v881_v35, %v882_v36  ;;  %v886_v42 = vsel %vm822_vm0, 16843009, %v1415_v22  ;;  %v1199_v44 = vrot.slane %v1189_v38, %v1439_v24  ;;  %vm366_vm4 = vnez %v358_v28 }
  0x87   :  { %v1192_v45 = vcombine.low %v885_v40, %v886_v42  ;;  %v374_v47 = vsel %vm366_vm4, 16843009, %v1415_v22  ;;  %v1213_v48 = vrot.slane %v1191_v43, %v1439_v24 }
  0x88   :  { %v1206_v46 = vrot.slane %v1190_v41, %v1439_v24  ;;  %v718_v49 = vcombine.high %v374_v47, %v374_v47  ;;  %v725_v50 = vrot.slane %v374_v47, %v1439_v24 }
  0x89   :  { %v1220_v51 = vrot.slane %v1192_v45, %v1439_v24 }
  0x8a   :  { %v1221_v52 = vcombine.low %v1199_v44, %v1206_v46  ;;  %v732_v53 = vrot.slane %v718_v49, %v1439_v24  ;;  %v733_v54 = vcombine.high %v725_v50, %v725_v50  ;;  %v741_v55 = vrot.slane %v725_v50, %v1439_v24 }
  0x8b   :  { %v1222_v56 = vcombine.low %v1213_v48, %v1220_v51 }
  0x8c   :  { %v1229_v57 = vrot.slane %v1221_v52, %v1439_v24  ;;  %v734_v58 = vcombine.high %v732_v53, %v732_v53  ;;  %v748_v59 = vrot.slane %v732_v53, %v1439_v24  ;;  %v755_v60 = vrot.slane %v733_v54, %v1439_v24 }
  0x8d   :  { %v763_v61 = vcombine.high %v741_v55, %v741_v55  ;;  %v1236_v62 = vrot.slane %v1222_v56, %v1439_v24  ;;  %vm823_vm2 = vnez %v741_v55 }
  0x8e   :  { %v762_v1 = vrot.slane %v734_v58, %v1439_v24  ;;  %v764_v2 = vcombine.high %v748_v59, %v748_v59  ;;  %v765_v3 = vcombine.high %v755_v60, %v755_v60  ;;  %vm824_vm13 = vnez %v755_v60 }
  0x8f   :  { %v1237_v4 = vcombine.low %v1229_v57, %v1236_v62  ;;  %vm825_vm5 = vnez %v763_v61  ;;  %vm827_vm10 = vnez %v748_v59  ;;  %v887_v5 = vsel %vm823_vm2, 16843009, %v1415_v22 }
  0x90   :  { %v766_v6 = vcombine.high %v762_v1, %v762_v1  ;;  %vm826_vm11 = vnez %v765_v3  ;;  %vm828_vm6 = vnez %v762_v1  ;;  %vm829_vm8 = vnez %v764_v2 }
  0x91   :  { %v1337_v7 = vsel %vm1582_vm12, %v1237_v4, %v1336_v0  ;;  %v888_v8 = vsel %vm824_vm13, 16843009, %v1415_v22  ;;  %v889_v17 = vsel %vm825_vm5, 16843009, %v1415_v22  ;;  %v890_v9 = vsel %vm826_vm11, 16843009, %v1415_v22 }
  0x92   :  { %1338 = vst [vmem:[#allocation5 + $0x30] sm:$0xff] %v1337_v7  ;;  %vm830_vm9 = vnez %v766_v6  ;;  %v891_v18 = vsel %vm827_vm10, 16843009, %v1415_v22  ;;  %v892_v10 = vsel %vm828_vm6, 16843009, %v1415_v22  ;;  %v1238_v11 = vcombine.low %v887_v5, %v888_v8 }
  0x93   :  { %v893_v19 = vsel %vm829_vm8, 16843009, %v1415_v22  ;;  %v894_v20 = vsel %vm830_vm9, 16843009, %v1415_v22  ;;  %v1239_v12 = vcombine.low %v889_v17, %v890_v9  ;;  %v1240_v13 = vcombine.low %v891_v18, %v892_v10  ;;  %v1339_v22 = vld [vmem:[#allocation5 + $0x38] sm:$0xff] }
  0x94   :  { %v1241_v14 = vcombine.low %v893_v19, %v894_v20  ;;  %v1248_v15 = vrot.slane %v1238_v11, %v1439_v24 }
  0x95   :  { %v1255_v16 = vrot.slane %v1239_v12, %v1439_v24  ;;  %v1262_v21 = vrot.slane %v1240_v13, %v1439_v24 }
  0x96   :  { %v1269_v23 = vrot.slane %v1241_v14, %v1439_v24 }
  0x97   :  { %v1270_v25 = vcombine.low %v1248_v15, %v1255_v16 }
  0x98   :  { %v1271_v26 = vcombine.low %v1262_v21, %v1269_v23 }
  0x99   :  { %v1278_v27 = vrot.slane %v1270_v25, %v1439_v24 }
  0x9a   :  { %v1285_v28 = vrot.slane %v1271_v26, %v1439_v24 }
  0x9c   :  { %v1286_v30 = vcombine.low %v1278_v27, %v1285_v28 }
  0x9e   :  { %v1340_v29 = vsel %vm1582_vm12, %v1286_v30, %v1339_v22 }
  0x9f   :  { %1341 = vst [vmem:[#allocation5 + $0x38] sm:$0xff] %v1340_v29 }
  0xa0   :  { %1396 = shalt.err (!%p1393_p9)
}
  0xa1   :  { %1351 = dma.vmem_to_hbm [thread:$0]  %s1349_s11, 1024, %s1846_s1, [#allocation4]  }
  0xa2   :  { %1407 = dma.done.wait [#allocation4], 1024  }
  0xa3   :  { %1408 = vsyncadd [#allocation4], 4294966272 }
  0xa4   :  { %1355 = vsyncpa [#allocation3], 1 }
  0xa5   :  { %1356 = vsyncpa [#allocation4], 1 }

</bundles_post_ra>
